<compile_context>
chip_gen: v6e
topology: v6e:2x2x1
jax: 0.10.0
libtpu: 0.0.40
codegen_flags: <defaults>
</compile_context>

<pallas_src>
import functools

import jax
import jax.numpy as jnp
from jax.experimental import pallas as pl
from jax.experimental.pallas import tpu as pltpu


def _channel_enhance_kernel(w_ref, b_ref, x_ref, o_ref, *, inv_hw):
    # w_ref, b_ref: SMEM scalars (conv1d(1,1,k=1) weight / bias)
    # x_ref, o_ref: (ROW_TILE, HW_pad) VMEM tiles; each row is one (b, c) pair.
    gw = w_ref[0]
    gb = b_ref[0]
    x = x_ref[...]
    # GAP over spatial: zero-padded lanes do not change the sum; divide by the
    # true H*W.  Accumulate in f32 (exact for f32 input, required for bf16).
    mean = jnp.sum(x.astype(jnp.float32), axis=-1, keepdims=True) * inv_hw
    # conv1d(1->1, k=1) on the pooled vector == per-row affine; sigmoid -> EUP slot.
    gate = jax.nn.sigmoid(gw * mean + gb)                     # (ROW_TILE, 1)
    # s_eca + x == x * (gate + 1), broadcast over the lane (spatial) axis.
    o_ref[...] = (x.astype(jnp.float32) * (gate + 1.0)).astype(o_ref.dtype)
    # TODO(synk): kernel_size > 1 mixes neighboring channels of the pooled vector
    # (conv1d over C); only the module's default kernel_size=1 is implemented.


def _round_up(n, m):
    return ((n + m - 1) // m) * m


def channel_enhance(x, w, b, *, target_block_bytes=2 * 1024 * 1024):
    """out = x * sigmoid(w * mean_hw(x) + b) + x.

    x: (B, C, H, W); w, b: (1,) conv1d(1, 1, k=1) weight / bias.
    """
    B, C, H, W = x.shape
    HW = H * W
    rows = B * C

    # Lane-dense last dim (multiple of 128) -> unmasked vector stores.
    hw_pad = _round_up(HW, 128)
    # Sublane-dense row tile (8 for f32, 16 for bf16), sized to ~target_block_bytes
    # so double-buffered in+out blocks fit v5e's 16 MiB / v7x's 32 MiB scoped VMEM.
    sub = 16 if x.dtype == jnp.bfloat16 else 8
    bytes_per_row = hw_pad * jnp.dtype(x.dtype).itemsize
    row_tile = max(sub, min(512, (target_block_bytes // bytes_per_row) // sub * sub))
    row_tile = min(row_tile, _round_up(rows, sub))
    rows_pad = _round_up(rows, row_tile)

    x2 = x.reshape(rows, HW)
    if rows_pad != rows or hw_pad != HW:
        x2 = jnp.pad(x2, ((0, rows_pad - rows), (0, hw_pad - HW)))

    grid = (rows_pad // row_tile,)
    kernel = functools.partial(_channel_enhance_kernel, inv_hw=1.0 / HW)

    out = pl.pallas_call(
        kernel,
        out_shape=jax.ShapeDtypeStruct((rows_pad, hw_pad), x.dtype),
        grid=grid,
        in_specs=[
            pl.BlockSpec(memory_space=pltpu.SMEM),                # w (scalar)
            pl.BlockSpec(memory_space=pltpu.SMEM),                # b (scalar)
            pl.BlockSpec((row_tile, hw_pad), lambda i: (i, 0)),   # x row-tile
        ],
        out_specs=pl.BlockSpec((row_tile, hw_pad), lambda i: (i, 0)),
        compiler_params=pltpu.CompilerParams(
            dimension_semantics=("parallel",)),
    )(w, b, x2)

    return out[:rows, :HW].reshape(B, C, H, W)


def _reference(x, w, b):
    mean = jnp.mean(x.astype(jnp.float32), axis=(2, 3), keepdims=True)
    gate = jax.nn.sigmoid(w[0] * mean + b[0])
    return (x * gate + x).astype(x.dtype)


if __name__ == "__main__":
    key = jax.random.PRNGKey(0)
    kx, kw, kb = jax.random.split(key, 3)

    B, C, H, W = 2, 4, 16, 16
    x = jax.random.normal(kx, (B, C, H, W), dtype=jnp.float32)
    # conv1d(1, 1, k=1) parameters: weight (1,1,1) -> scalar, bias (1,)
    w = jax.random.normal(kw, (1,), dtype=jnp.float32)
    b = jax.random.normal(kb, (1,), dtype=jnp.float32)

    out = channel_enhance(x, w, b)
    out = jax.block_until_ready(out)

    ref = _reference(x, w, b)
    assert out.shape == (B, C, H, W)
    assert jnp.allclose(out, ref, atol=1e-5, rtol=1e-5), "mismatch vs reference"
    print("KERNEL_OK")
</pallas_src>

<mosaic_0001>
module attributes {stable_mosaic.version = 11 : i64} {
  func.func @_channel_enhance_kernel(%arg0: i32, %arg1: memref<1xf32, #tpu.memory_space<smem>>, %arg2: memref<1xf32, #tpu.memory_space<smem>>, %arg3: memref<8x256xf32, #tpu.memory_space<vmem>>, %arg4: memref<8x256xf32, #tpu.memory_space<vmem>>) attributes {dimension_semantics = [#tpu.dimension_semantics<parallel>], iteration_bounds = array<i64: 1>, scalar_prefetch = 0 : i64, scratch_operands = 0 : i64, tpu.core_type = #tpu.core_type<tc>, window_params = [{transform_indices = @transform_0, window_bounds = array<i64: 1>}, {transform_indices = @transform_1, window_bounds = array<i64: 1>}, {transform_indices = @transform_2, window_bounds = array<i64: 8, 256>}, {transform_indices = @transform_3, window_bounds = array<i64: 8, 256>}]} {
    %c0 = arith.constant 0 : index
    %0 = memref.load %arg1[%c0] : memref<1xf32, #tpu.memory_space<smem>>
    %c0_0 = arith.constant 0 : index
    %1 = memref.load %arg2[%c0_0] : memref<1xf32, #tpu.memory_space<smem>>
    %c0_1 = arith.constant 0 : index
    %c0_2 = arith.constant 0 : index
    %2 = vector.load %arg3[%c0_1, %c0_2] : memref<8x256xf32, #tpu.memory_space<vmem>>, vector<8x256xf32>
    %cst = arith.constant dense<0.000000e+00> : vector<8xf32>
    %3 = vector.multi_reduction <add>, %2, %cst [1] : vector<8x256xf32> to vector<8xf32>
    %4 = vector.shape_cast %3 : vector<8xf32> to vector<8x1xf32>
    %cst_3 = arith.constant 3.906250e-03 : f32
    %5 = vector.broadcast %cst_3 : f32 to vector<8x1xf32>
    %6 = arith.mulf %4, %5 : vector<8x1xf32>
    %7 = vector.broadcast %0 : f32 to vector<8x1xf32>
    %8 = arith.mulf %7, %6 : vector<8x1xf32>
    %9 = vector.broadcast %1 : f32 to vector<8x1xf32>
    %10 = arith.addf %8, %9 : vector<8x1xf32>
    %11 = arith.negf %10 : vector<8x1xf32>
    %12 = math.exp %11 : vector<8x1xf32>
    %cst_4 = arith.constant 1.000000e+00 : f32
    %13 = vector.broadcast %cst_4 : f32 to vector<8x1xf32>
    %14 = arith.addf %13, %12 : vector<8x1xf32>
    %15 = arith.divf %13, %14 : vector<8x1xf32>
    %cst_5 = arith.constant 1.000000e+00 : f32
    %16 = vector.broadcast %cst_5 : f32 to vector<8x1xf32>
    %17 = arith.addf %15, %16 : vector<8x1xf32>
    %18 = vector.broadcast %17 : vector<8x1xf32> to vector<8x256xf32>
    %19 = arith.mulf %2, %18 : vector<8x256xf32>
    %c0_6 = arith.constant 0 : index
    %c0_7 = arith.constant 0 : index
    %20 = vector.load %arg4[%c0_6, %c0_7] : memref<8x256xf32, #tpu.memory_space<vmem>>, vector<8x256xf32>
    tpu.vector_store %arg4[%c0_6, %c0_7], %19 {strides = array<i32>} : memref<8x256xf32, #tpu.memory_space<vmem>>, vector<8x256xf32>,
    return
  }
  func.func @transform_0(%arg0: i32) -> i32 {
    %c0_i32 = arith.constant 0 : i32
    %c0_i32_0 = arith.constant 0 : i32
    return %c0_i32 : i32
  }
  func.func @transform_1(%arg0: i32) -> i32 {
    %c0_i32 = arith.constant 0 : i32
    %c0_i32_0 = arith.constant 0 : i32
    return %c0_i32 : i32
  }
  func.func @transform_2(%arg0: i32) -> (i32, i32) {
    %c0_i32 = arith.constant 0 : i32
    %c0_i32_0 = arith.constant 0 : i32
    return %arg0, %c0_i32 : i32, i32
  }
  func.func @transform_3(%arg0: i32) -> (i32, i32) {
    %c0_i32 = arith.constant 0 : i32
    %c0_i32_0 = arith.constant 0 : i32
    return %arg0, %c0_i32 : i32, i32
  }
}

</mosaic_0001>

<bundles_post_ra>
// kernel: tpu_custom_call.1
= control target key start
LH: loop header
LB: loop body
LE: loop exit
PB: predicated region body
PF: predicated region fallthrough
CT: control target
= control target key end

     0   :  { %10 = vsyncpa [#allocation5], 0  ;;  %s152_s0 = inlined_call_operand.<no memory space> [shape: f32[1], index: 0, kind: input, shape index: {}]   ;;  %s153_s1 = inlined_call_operand.<no memory space> [shape: f32[1], index: 1, kind: input, shape index: {}]   ;;  %s154_s2 = inlined_call_operand.hbm [shape: f32[8,256], index: 2, kind: input, shape index: {}]   ;;  %s155_s3 = inlined_call_operand.hbm [shape: f32[8,256], index: 3, kind: output, shape index: {}]  }
   0x1   :  { %11 = vsyncpa [#allocation6], 0  ;;  %s118_s12 = smov [#allocation4]  }
   0x2   :  { %s22_s13 = sshll.u32 %s118_s12, 4  ;;  %s23_s13 = int_to_ptr.vmem [resolvable:$true] %s22_s13 }
   0x3   :  { %s82_s14 = scalar_lea.vmem %s23_s13, 256  ;;  %p87_p1 = scmp.lt.s32.totalorder %s23_s13, %s23_s13 }
   0x4   :  { %p83_p0 = scmp.ne.s32.totalorder %s23_s13, %s82_s14  ;;  %p88_p2 = scmp.lt.s32.totalorder %s82_s14, %s82_s14 }
   0x6   :  { %p89_p3 = por %p88_p2, %p87_p1 }
   0x8   :  { %p90_p4 = pnand %p89_p3, %p83_p0 }
   0xa   :  { %93 = shalt.err (!%p90_p4)
}
   0xb   :  { %25 = dma.hbm_to_vmem [thread:$0]  %s154_s2, 256, %s23_s13, [#allocation5]  }
   0xc   :  { %114 = dma.done.wait [#allocation5], 256  }
   0xd   :  { %115 = vsyncadd [#allocation5], 4294967040  ;;  %v31_v0 = vld [vmem:[#allocation4] sm:$0xff]  ;;  %v32_v1 = vld [vmem:[#allocation4 + $0x8] sm:$0xff]  ;;  %v37_v4 = vstv %s152_s0  ;;  %v39_v6 = vstv %s153_s1  ;;  %s119_s2 = smov [#allocation7]  }
   0xe   :  { %v33_v2 = vadd.f32 %v32_v1, %v31_v0  ;;  %s58_s21 = sshll.u32 %s119_s2, 4  ;;  %s59_s21 = int_to_ptr.vmem [resolvable:$true] %s58_s21 }
   0xf   :  { %s94_s0 = scalar_lea.vmem %s59_s21, 256  ;;  %p99_p6 = scmp.lt.s32.totalorder %s59_s21, %s59_s21 }
  0x10   :  { %34 = vadd.xlane.f32.xlu0 %v33_v2  ;;  %p95_p5 = scmp.ne.s32.totalorder %s59_s21, %s94_s0  ;;  %p100_p7 = scmp.lt.s32.totalorder %s94_s0, %s94_s0 }
  0x12   :  { %p101_p8 = por %p100_p7, %p99_p6 }
  0x14   :  { %p102_p9 = pnand %p101_p8, %p95_p5 }
  0x99   :  { %v35_v3 = vpop.xlane.xlu0 %34 }
  0x9a   :  { %v36_v5 = vmul.f32 0.00390625, %v35_v3 }
  0x9c   :  { %v38_v7 = vmul.f32 %v37_v4, %v36_v5 }
  0x9e   :  { %v40_v8 = vadd.f32 %v39_v6, %v38_v7 }
  0xa0   :  { %v67_v9 = vmul.f32 -1.442695, %v40_v8 }
  0xa2   :  { %70 = vpow2.f32 %v67_v9 }
  0xaf   :  { %v71_v10 = vpop.eup %70 }
  0xb0   :  { %v44_v11 = vadd.f32 1.0, %v71_v10 }
  0xb2   :  { %72 = vrcp.f32 %v44_v11 }
  0xbf   :  { %v73_v12 = vpop.eup %72 }
  0xc0   :  { %v47_v13 = vadd.f32 1.0, %v73_v12 }
  0xc2   :  { %v48_v14 = vmul.f32 %v47_v13, %v31_v0  ;;  %v49_v15 = vmul.f32 %v47_v13, %v32_v1 }
  0xc4   :  { %50 = vst [vmem:[#allocation7] sm:$0xff] %v48_v14  ;;  %51 = vst [vmem:[#allocation7 + $0x8] sm:$0xff] %v49_v15 }
  0xc5   :  { %105 = shalt.err (!%p102_p9)
}
  0xc6   :  { %61 = dma.vmem_to_hbm [thread:$0]  %s59_s21, 256, %s155_s3, [#allocation6]  }
  0xc7   :  { %116 = dma.done.wait [#allocation6], 256  }
  0xc8   :  { %117 = vsyncadd [#allocation6], 4294967040 }
  0xc9   :  { %65 = vsyncpa [#allocation5], 1 }
  0xca   :  { %66 = vsyncpa [#allocation6], 1 }

</bundles_post_ra>
